<compile_context>
chip_gen: v7x
topology: tpu7x:2x2x1
jax: 0.10.0
libtpu: 0.0.40
codegen_flags: <defaults>
</compile_context>

<pallas_src>
import jax
import jax.numpy as jnp
from jax.experimental import pallas as pl
from jax.experimental.pallas import tpu as pltpu


def pmp_kernel(from_ref, to_ref, etype_ref, w1_ref, w2_ref, o_ref, x_scratch):
    """One row tile of PointMessagePassing.

    from_ref  : (TM, D)    f32   "from" embeddings row tile
    to_ref    : (TM, D)    f32   "to" embeddings row tile
    etype_ref : (TM, 1)    int32 edge type per row
    w1_ref    : (2D, MID)  bf16  first MLP layer
    w2_ref    : (MID, O*T) bf16  second MLP layer (all edge types, lane-dense)
    o_ref     : (TM, O)          gathered per-edge output
    x_scratch : (TM, 2D)   f32   VMEM staging for the [from | to] concat
    """
    D = from_ref.shape[-1]
    out_channels = o_ref.shape[-1]
    n_edge_types = w2_ref.shape[-1] // out_channels

    # Assemble [from | to] in VMEM (two sub-lane-range stores) so layer 1 is a
    # single K=2D MXU push; the concatenation never touches HBM.
    x_scratch[:, :D] = from_ref[...]
    x_scratch[:, D:] = to_ref[...]
    x = x_scratch[...].astype(jnp.bfloat16)

    # Layer 1: bf16 operands, f32 accumulation; ReLU in f32, back to bf16 for
    # the layer-2 MXU pushes.
    h = jnp.dot(x, w1_ref[...], preferred_element_type=jnp.float32)
    h = jnp.maximum(h, 0.0).astype(jnp.bfloat16)

    etype = etype_ref[...]                                      # (TM, 1) int32

    # Layer 2, streamed one edge type at a time.  w2_ref[:, t*O:(t+1)*O] is a
    # static (MID, O) slice of the ref, and each y_t is folded into the running
    # select immediately, so the full (TM, O*T) result is never live -> no
    # vreg spills.  Select chain (not add): exactly one type matches per row.
    acc = jnp.dot(h, w2_ref[:, :out_channels],
                  preferred_element_type=jnp.float32)           # edge type 0
    for t in range(1, n_edge_types):
        y_t = jnp.dot(h, w2_ref[:, t * out_channels:(t + 1) * out_channels],
                      preferred_element_type=jnp.float32)
        acc = jnp.where(etype == t, y_t, acc)

    # NOTE: rows whose edge_type falls outside [0, n_edge_types) keep the
    # type-0 result (the take_along_axis reference clamps instead); inputs are
    # assumed valid, as in the PyTorch module.  Padded rows of a partial last
    # tile compute garbage that is discarded on writeback.
    o_ref[...] = acc.astype(o_ref.dtype)


def _choose_tm(E, desired):
    """Largest row tile <= desired (multiple of 8), keeping >= 2 grid steps
    when possible so both v7x TensorCores get work."""
    tm = min(desired, E)
    if E > 8 and pl.cdiv(E, tm) < 2:
        tm = (E + 1) // 2
    if tm != E:
        tm = min(((tm + 7) // 8) * 8, E)
    return max(tm, 1)


def point_message_passing_forward(from_embeddings, to_embeddings, edge_types,
                                  w1, w2, out_channels, n_edge_types, tm=512):
    """from/to: (E, D), edge_types: (E,) int -> (E, out_channels)."""
    E, D = from_embeddings.shape
    assert to_embeddings.shape == (E, D)
    cin, mid = w1.shape
    assert cin == 2 * D, "w1 rows must equal 2 * embedding dim"
    wide = out_channels * n_edge_types
    assert w2.shape == (mid, wide)

    # Weights cast once to bf16 (MXU-native on v5e/v6e/v7x; halves weight DMA
    # bytes and VMEM footprint).  Accumulation inside the kernel stays f32.
    w1_bf = w1.astype(jnp.bfloat16)
    w2_bf = w2.astype(jnp.bfloat16)
    etype = edge_types.astype(jnp.int32).reshape(E, 1)

    tm = _choose_tm(E, tm)
    grid = (pl.cdiv(E, tm),)

    flops = 2 * E * (cin * mid + mid * wide)
    bytes_accessed = (4 * E * (2 * D + 1 + out_channels)          # f32 acts/out
                      + 2 * (cin * mid + mid * wide))             # bf16 weights

    out = pl.pallas_call(
        pmp_kernel,
        out_shape=jax.ShapeDtypeStruct((E, out_channels), from_embeddings.dtype),
        grid=grid,
        in_specs=[
            pl.BlockSpec((tm, D), lambda i: (i, 0)),              # from tile
            pl.BlockSpec((tm, D), lambda i: (i, 0)),              # to tile
            pl.BlockSpec((tm, 1), lambda i: (i, 0)),              # edge types
            pl.BlockSpec((cin, mid), lambda i: (0, 0)),           # W1 (whole)
            pl.BlockSpec((mid, wide), lambda i: (0, 0)),          # W2 (whole)
        ],
        out_specs=pl.BlockSpec((tm, out_channels), lambda i: (i, 0)),
        scratch_shapes=[pltpu.VMEM((tm, cin), jnp.float32)],      # [from|to]
        compiler_params=pltpu.CompilerParams(
            dimension_semantics=("parallel",),
        ),
        cost_estimate=pl.CostEstimate(
            flops=flops, transcendentals=0, bytes_accessed=bytes_accessed),
    )(from_embeddings, to_embeddings, etype, w1_bf, w2_bf)

    return out


def pmp_ref(from_embeddings, to_embeddings, edge_types, w1, w2, out_channels):
    """Pure-JAX reference mirroring the PyTorch forward (f32)."""
    x = jnp.concatenate([from_embeddings, to_embeddings], axis=-1)
    h = jnp.maximum(x @ w1, 0.0)
    y = h @ w2                                                    # (E, O*T)
    idx = (edge_types.astype(jnp.int32)[:, None] * out_channels
           + jnp.arange(out_channels, dtype=jnp.int32)[None, :])
    return jnp.take_along_axis(y, idx, axis=-1)


if __name__ == "__main__":
    # Module config: PointMessagePassing(dimension, in_channels, mid_channels,
    #                                    out_channels, n_edge_types)
    E = 256                 # number of edges (rows)
    D = 64                  # per-embedding feature dim
    in_channels = 2 * D     # 128 (concatenated from/to)
    mid_channels = 128
    out_channels = 128      # lane-dense output
    n_edge_types = 4

    key = jax.random.PRNGKey(0)
    k_from, k_to, k_et, k_w1, k_w2 = jax.random.split(key, 5)

    from_embeddings = jax.random.normal(k_from, (E, D), dtype=jnp.float32)
    to_embeddings = jax.random.normal(k_to, (E, D), dtype=jnp.float32)
    edge_types = jax.random.randint(k_et, (E,), 0, n_edge_types, dtype=jnp.int32)

    # Deterministic synthetic MLP parameters (bias=False), stored as (in, out).
    w1 = jax.random.normal(k_w1, (in_channels, mid_channels), dtype=jnp.float32) * 0.05
    w2 = jax.random.normal(
        k_w2, (mid_channels, out_channels * n_edge_types), dtype=jnp.float32) * 0.05

    out = point_message_passing_forward(
        from_embeddings, to_embeddings, edge_types, w1, w2,
        out_channels=out_channels, n_edge_types=n_edge_types)
    out = jax.block_until_ready(out)

    ref = pmp_ref(from_embeddings, to_embeddings, edge_types, w1, w2, out_channels)
    assert out.shape == (E, out_channels)
    # bf16 matmul operands (f32 accumulate) vs the f32 reference -> relaxed tol.
    assert jnp.allclose(out, ref, atol=2e-2, rtol=2e-2), "mismatch vs reference"

    print("KERNEL_OK")
</pallas_src>

<mosaic_0001>
module attributes {stable_mosaic.version = 11 : i64} {
  func.func @pmp_kernel(%arg0: i32, %arg1: memref<128x64xf32, #tpu.memory_space<vmem>>, %arg2: memref<128x64xf32, #tpu.memory_space<vmem>>, %arg3: memref<128x1xi32, #tpu.memory_space<vmem>>, %arg4: memref<128x128xbf16, #tpu.memory_space<vmem>>, %arg5: memref<128x512xbf16, #tpu.memory_space<vmem>>, %arg6: memref<128x128xf32, #tpu.memory_space<vmem>>, %arg7: memref<128x128xf32, #tpu.memory_space<vmem>>) attributes {dimension_semantics = [#tpu.dimension_semantics<parallel>], iteration_bounds = array<i64: 2>, scalar_prefetch = 0 : i64, scratch_operands = 1 : i64, tpu.core_type = #tpu.core_type<tc>, window_params = [{transform_indices = @transform_0, window_bounds = array<i64: 128, 64>}, {transform_indices = @transform_1, window_bounds = array<i64: 128, 64>}, {transform_indices = @transform_2, window_bounds = array<i64: 128, 1>}, {pipeline_mode = #tpu.pipeline_mode<synchronous>, transform_indices = @transform_3, window_bounds = array<i64: 128, 128>}, {pipeline_mode = #tpu.pipeline_mode<synchronous>, transform_indices = @transform_4, window_bounds = array<i64: 128, 512>}, {transform_indices = @transform_5, window_bounds = array<i64: 128, 128>}]} {
    %c0 = arith.constant 0 : index
    %c0_0 = arith.constant 0 : index
    %0 = vector.load %arg1[%c0, %c0_0] : memref<128x64xf32, #tpu.memory_space<vmem>>, vector<128x64xf32>
    %c0_1 = arith.constant 0 : index
    %c0_2 = arith.constant 0 : index
    %1 = vector.load %arg7[%c0_1, %c0_2] : memref<128x128xf32, #tpu.memory_space<vmem>>, vector<128x64xf32>
    tpu.vector_store %arg7[%c0_1, %c0_2], %0 {strides = array<i32>} : memref<128x128xf32, #tpu.memory_space<vmem>>, vector<128x64xf32>,
    %c0_3 = arith.constant 0 : index
    %c0_4 = arith.constant 0 : index
    %2 = vector.load %arg2[%c0_3, %c0_4] : memref<128x64xf32, #tpu.memory_space<vmem>>, vector<128x64xf32>
    %c0_5 = arith.constant 0 : index
    %c64 = arith.constant 64 : index
    %3 = vector.load %arg7[%c0_5, %c64] : memref<128x128xf32, #tpu.memory_space<vmem>>, vector<128x64xf32>
    tpu.vector_store %arg7[%c0_5, %c64], %2 {strides = array<i32>} : memref<128x128xf32, #tpu.memory_space<vmem>>, vector<128x64xf32>,
    %c0_6 = arith.constant 0 : index
    %c0_7 = arith.constant 0 : index
    %4 = vector.load %arg7[%c0_6, %c0_7] : memref<128x128xf32, #tpu.memory_space<vmem>>, vector<128x128xf32>
    %5 = arith.truncf %4 : vector<128x128xf32> to vector<128x128xbf16>
    %c0_8 = arith.constant 0 : index
    %c0_9 = arith.constant 0 : index
    %6 = vector.load %arg4[%c0_8, %c0_9] : memref<128x128xbf16, #tpu.memory_space<vmem>>, vector<128x128xbf16>
    %cst = arith.constant dense<0.000000e+00> : vector<128x128xf32>
    %7 = tpu.matmul %5, %6, %cst {dimension_numbers = #tpu.dot_dimension_numbers<[1], [0], [0], [1], [0, 0, 1, 1], [], []>} : vector<128x128xbf16>, vector<128x128xbf16>, vector<128x128xf32> -> vector<128x128xf32>
    %cst_10 = arith.constant 0.000000e+00 : f32
    %8 = vector.broadcast %cst_10 : f32 to vector<128x128xf32>
    %9 = arith.maximumf %7, %8 : vector<128x128xf32>
    %10 = arith.truncf %9 : vector<128x128xf32> to vector<128x128xbf16>
    %c0_11 = arith.constant 0 : index
    %c0_12 = arith.constant 0 : index
    %11 = vector.load %arg3[%c0_11, %c0_12] : memref<128x1xi32, #tpu.memory_space<vmem>>, vector<128x1xi32>
    %c0_13 = arith.constant 0 : index
    %c0_14 = arith.constant 0 : index
    %12 = vector.load %arg5[%c0_13, %c0_14] : memref<128x512xbf16, #tpu.memory_space<vmem>>, vector<128x128xbf16>
    %cst_15 = arith.constant dense<0.000000e+00> : vector<128x128xf32>
    %13 = tpu.matmul %10, %12, %cst_15 {dimension_numbers = #tpu.dot_dimension_numbers<[1], [0], [0], [1], [0, 0, 1, 1], [], []>} : vector<128x128xbf16>, vector<128x128xbf16>, vector<128x128xf32> -> vector<128x128xf32>
    %c0_16 = arith.constant 0 : index
    %c128 = arith.constant 128 : index
    %14 = vector.load %arg5[%c0_16, %c128] : memref<128x512xbf16, #tpu.memory_space<vmem>>, vector<128x128xbf16>
    %cst_17 = arith.constant dense<0.000000e+00> : vector<128x128xf32>
    %15 = tpu.matmul %10, %14, %cst_17 {dimension_numbers = #tpu.dot_dimension_numbers<[1], [0], [0], [1], [0, 0, 1, 1], [], []>} : vector<128x128xbf16>, vector<128x128xbf16>, vector<128x128xf32> -> vector<128x128xf32>
    %c1_i32 = arith.constant 1 : i32
    %16 = vector.broadcast %c1_i32 : i32 to vector<128x1xi32>
    %17 = arith.cmpi eq, %11, %16 : vector<128x1xi32>
    %18 = vector.shape_cast %17 : vector<128x1xi1> to vector<128x1xi1>
    %19 = vector.broadcast %18 : vector<128x1xi1> to vector<128x128xi1>
    %20 = arith.select %19, %15, %13 : vector<128x128xi1>, vector<128x128xf32>
    %c0_18 = arith.constant 0 : index
    %c256 = arith.constant 256 : index
    %21 = vector.load %arg5[%c0_18, %c256] : memref<128x512xbf16, #tpu.memory_space<vmem>>, vector<128x128xbf16>
    %cst_19 = arith.constant dense<0.000000e+00> : vector<128x128xf32>
    %22 = tpu.matmul %10, %21, %cst_19 {dimension_numbers = #tpu.dot_dimension_numbers<[1], [0], [0], [1], [0, 0, 1, 1], [], []>} : vector<128x128xbf16>, vector<128x128xbf16>, vector<128x128xf32> -> vector<128x128xf32>
    %c2_i32 = arith.constant 2 : i32
    %23 = vector.broadcast %c2_i32 : i32 to vector<128x1xi32>
    %24 = arith.cmpi eq, %11, %23 : vector<128x1xi32>
    %25 = vector.shape_cast %24 : vector<128x1xi1> to vector<128x1xi1>
    %26 = vector.broadcast %25 : vector<128x1xi1> to vector<128x128xi1>
    %27 = arith.select %26, %22, %20 : vector<128x128xi1>, vector<128x128xf32>
    %c0_20 = arith.constant 0 : index
    %c384 = arith.constant 384 : index
    %28 = vector.load %arg5[%c0_20, %c384] : memref<128x512xbf16, #tpu.memory_space<vmem>>, vector<128x128xbf16>
    %cst_21 = arith.constant dense<0.000000e+00> : vector<128x128xf32>
    %29 = tpu.matmul %10, %28, %cst_21 {dimension_numbers = #tpu.dot_dimension_numbers<[1], [0], [0], [1], [0, 0, 1, 1], [], []>} : vector<128x128xbf16>, vector<128x128xbf16>, vector<128x128xf32> -> vector<128x128xf32>
    %c3_i32 = arith.constant 3 : i32
    %30 = vector.broadcast %c3_i32 : i32 to vector<128x1xi32>
    %31 = arith.cmpi eq, %11, %30 : vector<128x1xi32>
    %32 = vector.shape_cast %31 : vector<128x1xi1> to vector<128x1xi1>
    %33 = vector.broadcast %32 : vector<128x1xi1> to vector<128x128xi1>
    %34 = arith.select %33, %29, %27 : vector<128x128xi1>, vector<128x128xf32>
    %c0_22 = arith.constant 0 : index
    %c0_23 = arith.constant 0 : index
    %35 = vector.load %arg6[%c0_22, %c0_23] : memref<128x128xf32, #tpu.memory_space<vmem>>, vector<128x128xf32>
    tpu.vector_store %arg6[%c0_22, %c0_23], %34 {strides = array<i32>} : memref<128x128xf32, #tpu.memory_space<vmem>>, vector<128x128xf32>,
    return
  }
  func.func @transform_0(%arg0: i32) -> (i32, i32) {
    %c0_i32 = arith.constant 0 : i32
    %c0_i32_0 = arith.constant 0 : i32
    return %arg0, %c0_i32 : i32, i32
  }
  func.func @transform_1(%arg0: i32) -> (i32, i32) {
    %c0_i32 = arith.constant 0 : i32
    %c0_i32_0 = arith.constant 0 : i32
    return %arg0, %c0_i32 : i32, i32
  }
  func.func @transform_2(%arg0: i32) -> (i32, i32) {
    %c0_i32 = arith.constant 0 : i32
    %c0_i32_0 = arith.constant 0 : i32
    return %arg0, %c0_i32 : i32, i32
  }
  func.func @transform_3(%arg0: i32) -> (i32, i32) {
    %c0_i32 = arith.constant 0 : i32
    %c0_i32_0 = arith.constant 0 : i32
    %c0_i32_1 = arith.constant 0 : i32
    return %c0_i32, %c0_i32_0 : i32, i32
  }
  func.func @transform_4(%arg0: i32) -> (i32, i32) {
    %c0_i32 = arith.constant 0 : i32
    %c0_i32_0 = arith.constant 0 : i32
    %c0_i32_1 = arith.constant 0 : i32
    return %c0_i32, %c0_i32_0 : i32, i32
  }
  func.func @transform_5(%arg0: i32) -> (i32, i32) {
    %c0_i32 = arith.constant 0 : i32
    %c0_i32_0 = arith.constant 0 : i32
    return %arg0, %c0_i32 : i32, i32
  }
}

</mosaic_0001>

<bundles_post_ra>
// kernel: tpu_custom_call.1
= control target key start
LH: loop header
LB: loop body
LE: loop exit
PB: predicated region body
PF: predicated region fallthrough
CT: control target
= control target key end

     0   :  { %10 = vsyncpa [#allocation4], 0  ;;  %s2901_s0 = inlined_call_operand.vmem [shape: f32[256,64], index: 0, kind: input, shape index: {}]   ;;  %s2902_s1 = inlined_call_operand.vmem [shape: f32[256,64], index: 1, kind: input, shape index: {}]   ;;  %s2903_s2 = inlined_call_operand.vmem [shape: s32[256,1], index: 2, kind: input, shape index: {}]   ;;  %s2904_s3 = inlined_call_operand.vmem [shape: bf16[128,128], index: 3, kind: input, shape index: {}]   ;;  %s2905_s4 = inlined_call_operand.vmem [shape: bf16[128,512], index: 4, kind: input, shape index: {}]   ;;  %s2906_s5 = inlined_call_operand.hbm [shape: f32[256,128], index: 5, kind: output, shape index: {}]  }
   0x1   :  { %12 = vsyncpa [#allocation4 + $0x1], 0  ;;  %s2219_s18 = smov 0   ;;  %s2221_s19 = smov 0  }
   0x2   :  { %s2223_s20 = smov 0   ;;  %s2225_s21 = smov 0  }
   0x3 LB: > { %s2240_s22 = sadd.s32 4294967295, %s2182_s21   ;;  %s1722_s23 = sadd.s32 4294967294, %s2182_s21   ;;  %s2182_s21 = sphi %s2225_s21, %s2912_s21   ;;  %s2178_s20 = sphi %s2223_s20, %s2911_s20   ;;  %s2174_s19 = sphi %s2221_s19, %s2910_s19   ;;  %s2170_s18 = sphi %s2219_s18, %s2909_s18  }
   0x4   : > { %s2244_s24 = sadd.s32 1, %s2182_s21   ;;  %s145_s25 = sadd.s32 1, %s2178_s20 }
   0x5   : > { %s142_s26 = ssub.s32 %s2182_s21, %s2244_s24  ;;  %p155_p0 = scmp.ne.s32.totalorder %s2178_s20, %s2174_s19 }
   0x6   : > { %p143_p1 = scmp.eq.s32.totalorder %s142_s26, 0  ;;  %p156_p2 = scmp.eq.s32.totalorder %s2240_s22, 1 }
   0x7   : > { %p161_p3 = scmp.ne.s32.totalorder %s2174_s19, %s2170_s18  ;;  %p162_p4 = scmp.eq.s32.totalorder %s1722_s23, 1 }
   0x8   : > { %s2255_s27 = scalar_select %p143_p1, %s2178_s20, %s145_s25  }
   0x9   : > { %p2257_p5 = por %p156_p2, %p155_p0  ;;  %p2261_p6 = por %p162_p4, %p161_p3 }
   0xa   : > { %p1725_p7 = scmp.ge.s32.totalorder %s2182_s21, 1  ;;  %p213_p8 = scmp.lt.s32.totalorder %s2182_s21, 3 }
   0xc   : > { %p214_p9 = pnand %p1725_p7, %p213_p8 }
   0xd   : > { %s1727_s30 = sshll.u32 (!%p214_p9), %s2240_s22, 4  ;;  %v2080_v0 = vld [vmem:[%s2904_s3] sm:$0xff] (!%p214_p9)   ;;  %v2081_v1 = vld [vmem:[%s2904_s3 + $0x8] sm:$0xff] (!%p214_p9)   ;;  %v2082_v2 = vld [vmem:[%s2904_s3 + $0x10] sm:$0xff] (!%p214_p9)   ;;  %s2184_s16 = smov (!%p214_p9), 64   ;;  %vm287_vm0 = vcmask (!%p214_p9), 523264  }
   0xe   : > { %217 = sbr.rel (%p214_p9) target bundleno = 678 (0x2a6), region = 40  ;;  %p252_p10 = scmp.lt.s32.totalorder (!%p214_p9), %s1727_s30, 31  ;;  %1859 = vmatprep.subr.bf16.mxu0 (!%p214_p9), %v2080_v0  ;;  %v2083_v7 = vld [vmem:[%s2904_s3 + $0x18] sm:$0xff] (!%p214_p9)   ;;  %v2084_v13 = vld [vmem:[%s2904_s3 + $0x20] sm:$0xff] (!%p214_p9)   ;;  %v2085_v19 = vld [vmem:[%s2904_s3 + $0x28] sm:$0xff] (!%p214_p9)   ;;  %v2185_v45 = vmov (!%p214_p9), 0  }
   0xf   : > { %1860 = vmatpush3.bf16.msra.mxu0 (!%p214_p9), %v2080_v0  ;;  %v2086_v30 = vld [vmem:[%s2904_s3 + $0x30] sm:$0xff] (!%p214_p9)   ;;  %v2087_v35 = vld [vmem:[%s2904_s3 + $0x38] sm:$0xff] (!%p214_p9)   ;;  %2079 = vset.pattern.permute.xlu1 (!%p214_p9), %v2185_v45  ;;  %vm384_vm11 = vcmask (!%p214_p9), 1048064   ;;  %s1778_s8 = sshll.u32 (!%p214_p9), %s2240_s22, 11  ;;  %s2186_s12 = smov (!%p214_p9), [#allocation3]  }
  0x10   : > { %1861 = vmatprep.subr.bf16.mxu0 (!%p214_p9), %v2081_v1  ;;  %v2088_v40 = vld [vmem:[%s2905_s4] ss:$16 sps:$4 sm:$0xff] (!%p214_p9)   ;;  %v2374_v41 = vld [vmem:[%s2905_s4 + $0x4] ss:$16 sps:$4 sm:$0xff] (!%p214_p9)   ;;  %2078 = vset.pattern.permute.xlu0 (!%p214_p9), %v2185_v45  ;;  %s2851_s9 = scalar_lea.hbm (!%p214_p9), %s2906_s5, %s1778_s8  ;;  %s2124_s14 = sshll.u32 (!%p214_p9), %s2186_s12, 4  ;;  %s2125_s14 = int_to_ptr.vmem [resolvable:$false] %s2124_s14 }
  0x11   : > { %v2090_v42 = vld [vmem:[%s2905_s4 + $0x20] ss:$16 sps:$4 sm:$0xff] (!%p214_p9)   ;;  %1891 = vmatprep.subr.bf16.mxu1 (!%p214_p9), %v2088_v40  ;;  %s2126_s15 = scalar_lea.vmem (!%p214_p9), %s2125_s14, 4096 }
  0x12   : > { %1892 = vmatpush3.bf16.msra.mxu1 (!%p214_p9), %v2088_v40  ;;  %v2092_v52 = vld [vmem:[%s2905_s4 + $0x40] ss:$16 sps:$4 sm:$0xff] (!%p214_p9)  }
  0x13   : > { %1862 = vmatpush3.bf16.msra.mxu0 (!%p214_p9), %v2081_v1  ;;  %1893 = vmatprep.subr.bf16.mxu1 (!%p214_p9), %v2090_v42  ;;  %v2094_v57 = vld [vmem:[%s2905_s4 + $0x60] ss:$16 sps:$4 sm:$0xff] (!%p214_p9)  }
  0x14   : > { %1863 = vmatprep.subr.bf16.mxu0 (!%p214_p9), %v2082_v2  ;;  %v2096_v0 = vld [vmem:[%s2905_s4 + $0x80] ss:$16 sps:$4 sm:$0xff] (!%p214_p9)  }
  0x15   : > { %s2914_s30 = smov (!%p252_p10, %s1727_s30), 31  ;;  %v2098_v1 = vld [vmem:[%s2905_s4 + $0xa0] ss:$16 sps:$4 sm:$0xff]  }
  0x16   : > { %s2274_s10 = sshll.u32 %s2914_s30, 3  ;;  %1894 = vmatpush3.bf16.msra.mxu1 %v2090_v42  ;;  %v2099_v42 = vld [vmem:[%s2905_s4 + $0xa4] ss:$16 sps:$4 sm:$0xff]  }
  0x17   : > { %s2280_s13 = scalar_lea.vmem %s2902_s1, %s2274_s10  ;;  %s2298_s30 = scalar_lea.vmem %s2901_s0, %s2274_s10  ;;  %1864 = vmatpush3.bf16.msra.mxu0 %v2082_v2  ;;  %1895 = vmatprep.subr.bf16.mxu1 %v2092_v52 }
  0x18   : > { %v306_v3 = vld [vmem:[%s2280_s13 + $0x10] sm:$0xff]  ;;  %v304_v4 = vld [vmem:[%s2280_s13] sm:$0xff]  ;;  %v307_v5 = vld [vmem:[%s2280_s13 + $0x18] sm:$0xff]  ;;  %1865 = vmatprep.subr.bf16.mxu0 %v2083_v7  ;;  %s2380_s7 = scalar_lea.vmem %s2903_s2, %s2274_s10 }
  0x19   : > { %340 = vrot.lane.b32.xlu1 %v306_v3, %s2184_s16  ;;  %336 = vrot.lane.b32.xlu0 %v304_v4, %s2184_s16  ;;  %v305_v6 = vld [vmem:[%s2280_s13 + $0x8] sm:$0xff]  ;;  %v308_v9 = vld [vmem:[%s2280_s13 + $0x20] sm:$0xff] }
  0x1a   : > { %v309_v8 = vld [vmem:[%s2280_s13 + $0x28] sm:$0xff]  ;;  %v273_v10 = vld [vmem:[%s2298_s30 + $0x10] sm:$0xff]  ;;  %v271_v11 = vld [vmem:[%s2298_s30] sm:$0xff]  ;;  %1896 = vmatpush3.bf16.msra.mxu1 %v2092_v52 }
  0x1b   : > { %v274_v12 = vld [vmem:[%s2298_s30 + $0x18] sm:$0xff]  ;;  %290 = vst.msk [vmem:[#allocation2 + $0x10] sm:$0xff] %vm287_vm0, %v273_v10  ;;  %288 = vst.msk [vmem:[#allocation2] sm:$0xff] %vm287_vm0, %v271_v11  ;;  %v272_v14 = vld [vmem:[%s2298_s30 + $0x8] sm:$0xff]  ;;  %1866 = vmatpush3.bf16.msra.mxu0 %v2083_v7  ;;  %1897 = vmatprep.subr.bf16.mxu1 %v2094_v57 }
  0x1c   : > { %291 = vst.msk [vmem:[#allocation2 + $0x18] sm:$0xff] %vm287_vm0, %v274_v12  ;;  %v276_v15 = vld [vmem:[%s2298_s30 + $0x28] sm:$0xff]  ;;  %v311_v16 = vld [vmem:[%s2280_s13 + $0x38] sm:$0xff]  ;;  %289 = vst.msk [vmem:[#allocation2 + $0x8] sm:$0xff] %vm287_vm0, %v272_v14  ;;  %1867 = vmatprep.subr.bf16.mxu0 %v2084_v13 }
  0x1d   : > { %342 = vrot.lane.b32.xlu1 %v307_v5, %s2184_s16  ;;  %338 = vrot.lane.b32.xlu0 %v305_v6, %s2184_s16  ;;  %293 = vst.msk [vmem:[#allocation2 + $0x28] sm:$0xff] %vm287_vm0, %v276_v15  ;;  %v275_v17 = vld [vmem:[%s2298_s30 + $0x20] sm:$0xff]  ;;  %v310_v18 = vld [vmem:[%s2280_s13 + $0x30] sm:$0xff] }
  0x1e   : > { %292 = vst.msk [vmem:[#allocation2 + $0x20] sm:$0xff] %vm287_vm0, %v275_v17  ;;  %v278_v20 = vld [vmem:[%s2298_s30 + $0x38] sm:$0xff]  ;;  %v277_v21 = vld [vmem:[%s2298_s30 + $0x30] sm:$0xff]  ;;  %v280_v22 = vld [vmem:[%s2298_s30 + $0x48] sm:$0xff]  ;;  %1898 = vmatpush3.bf16.msra.mxu1 %v2094_v57 }
  0x1f   : > { %295 = vst.msk [vmem:[#allocation2 + $0x38] sm:$0xff] %vm287_vm0, %v278_v20  ;;  %v279_v23 = vld [vmem:[%s2298_s30 + $0x40] sm:$0xff]  ;;  %294 = vst.msk [vmem:[#allocation2 + $0x30] sm:$0xff] %vm287_vm0, %v277_v21  ;;  %v282_v24 = vld [vmem:[%s2298_s30 + $0x58] sm:$0xff]  ;;  %1868 = vmatpush3.bf16.msra.mxu0 %v2084_v13  ;;  %1899 = vmatprep.subr.bf16.mxu1 %v2096_v0 }
  0x20   : > { %297 = vst.msk [vmem:[#allocation2 + $0x48] sm:$0xff] %vm287_vm0, %v280_v22  ;;  %296 = vst.msk [vmem:[#allocation2 + $0x40] sm:$0xff] %vm287_vm0, %v279_v23  ;;  %v281_v25 = vld [vmem:[%s2298_s30 + $0x50] sm:$0xff]  ;;  %v284_v26 = vld [vmem:[%s2298_s30 + $0x68] sm:$0xff]  ;;  %1869 = vmatprep.subr.bf16.mxu0 %v2085_v19 }
  0x21   : > { %346 = vrot.lane.b32.xlu1 %v309_v8, %s2184_s16  ;;  %344 = vrot.lane.b32.xlu0 %v308_v9, %s2184_s16  ;;  %v313_v27 = vld [vmem:[%s2280_s13 + $0x48] sm:$0xff]  ;;  %v312_v28 = vld [vmem:[%s2280_s13 + $0x40] sm:$0xff]  ;;  %299 = vst.msk [vmem:[#allocation2 + $0x58] sm:$0xff] %vm287_vm0, %v282_v24  ;;  %298 = vst.msk [vmem:[#allocation2 + $0x50] sm:$0xff] %vm287_vm0, %v281_v25 }
  0x22   : > { %301 = vst.msk [vmem:[#allocation2 + $0x68] sm:$0xff] %vm287_vm0, %v284_v26  ;;  %v283_v29 = vld [vmem:[%s2298_s30 + $0x60] sm:$0xff]  ;;  %v286_v31 = vld [vmem:[%s2298_s30 + $0x78] sm:$0xff]  ;;  %v285_v32 = vld [vmem:[%s2298_s30 + $0x70] sm:$0xff]  ;;  %1900 = vmatpush3.bf16.msra.mxu1 %v2096_v0  ;;  %s248_s30 = sand.u32 1, %s2174_s19  }
  0x23   : > { %300 = vst.msk [vmem:[#allocation2 + $0x60] sm:$0xff] %vm287_vm0, %v283_v29  ;;  %v315_v33 = vld [vmem:[%s2280_s13 + $0x58] sm:$0xff]  ;;  %v314_v34 = vld [vmem:[%s2280_s13 + $0x50] sm:$0xff]  ;;  %303 = vst.msk [vmem:[#allocation2 + $0x78] sm:$0xff] %vm287_vm0, %v286_v31  ;;  %1870 = vmatpush3.bf16.msra.mxu0 %v2085_v19  ;;  %1901 = vmatprep.subr.bf16.mxu1 %v2098_v1  ;;  %s1726_s6 = sshll.u32 %s248_s30, 7  ;;  %s2860_s22 = scalar_lea.sflag [#allocation4], %s248_s30 }
  0x24   : > { %302 = vst.msk [vmem:[#allocation2 + $0x70] sm:$0xff] %vm287_vm0, %v285_v32  ;;  %1871 = vmatprep.subr.bf16.mxu0 %v2086_v30  ;;  %v317_v36 = vld [vmem:[%s2280_s13 + $0x68] sm:$0xff]  ;;  %v316_v37 = vld [vmem:[%s2280_s13 + $0x60] sm:$0xff]  ;;  %v319_v38 = vld [vmem:[%s2280_s13 + $0x78] sm:$0xff] }
  0x25   : > { %350 = vrot.lane.b32.xlu1 %v311_v16, %s2184_s16  ;;  %348 = vrot.lane.b32.xlu0 %v310_v18, %s2184_s16  ;;  %v318_v39 = vld [vmem:[%s2280_s13 + $0x70] sm:$0xff]  ;;  %v2386_v43 = vld [vmem:[%s2380_s7 + $0x8] sm:$0xff]  ;;  %s2804_s13 = scalar_lea.vmem [#allocation3], %s1726_s6 }
  0x26   : > { %v2389_v44 = vld [vmem:[%s2380_s7] sm:$0xff]  ;;  %vm949_vm1 = vcmp.eq.s32.totalorder %v2386_v43, 1  ;;  %v2399_v48 = vld [vmem:[%s2380_s7 + $0x10] sm:$0xff]  ;;  %v2402_v49 = vld [vmem:[%s2380_s7 + $0x18] sm:$0xff]  ;;  %1902 = vmatpush3.bf16.msra.mxu1 %v2098_v1 }
  0x27   : > { %1872 = vmatpush3.bf16.msra.mxu0 %v2086_v30  ;;  %vm948_vm2 = vcmp.eq.s32.totalorder %v2389_v44, 1  ;;  %v965_v46 = vsel %vm949_vm1, 1, %v2185_v45  ;;  %vm950_vm3 = vcmp.eq.s32.totalorder %v2399_v48, 1  ;;  %vm951_vm4 = vcmp.eq.s32.totalorder %v2402_v49, 1  ;;  %v2408_v50 = vld [vmem:[%s2380_s7 + $0x20] sm:$0xff]  ;;  %v2411_v51 = vld [vmem:[%s2380_s7 + $0x28] sm:$0xff] }
  0x28   : > { %1873 = vmatprep.subr.bf16.mxu0 %v2087_v35  ;;  %v964_v47 = vsel %vm948_vm2, 1, %v2185_v45  ;;  %vm952_vm5 = vcmp.eq.s32.totalorder %v2408_v50, 1  ;;  %vm953_vm6 = vcmp.eq.s32.totalorder %v2411_v51, 1  ;;  %v2420_v53 = vld [vmem:[%s2380_s7 + $0x30] sm:$0xff]  ;;  %v2423_v54 = vld [vmem:[%s2380_s7 + $0x38] sm:$0xff]  ;;  %v966_v55 = vsel %vm950_vm3, 1, %v2185_v45 }
  0x29   : > { %354 = vrot.lane.b32.xlu1 %v313_v27, %s2184_s16  ;;  %352 = vrot.lane.b32.xlu0 %v312_v28, %s2184_s16  ;;  %v967_v56 = vsel %vm951_vm4, 1, %v2185_v45  ;;  %vm954_vm7 = vcmp.eq.s32.totalorder %v2420_v53, 1  ;;  %vm955_vm8 = vcmp.eq.s32.totalorder %v2423_v54, 1  ;;  %v968_v58 = vsel %vm952_vm5, 1, %v2185_v45  ;;  %v2435_v60 = vld [vmem:[%s2380_s7 + $0x40] sm:$0xff]  ;;  %v2438_v61 = vld [vmem:[%s2380_s7 + $0x48] sm:$0xff] }
  0x2a   : > { %v969_v59 = vsel %vm953_vm6, 1, %v2185_v45  ;;  %v970_v62 = vsel %vm954_vm7, 1, %v2185_v45  ;;  %v971_v63 = vsel %vm955_vm8, 1, %v2185_v45  ;;  %vm956_vm9 = vcmp.eq.s32.totalorder %v2435_v60, 1  ;;  %v2091_v18 = vld [vmem:[%s2905_s4 + $0x24] ss:$16 sps:$4 sm:$0xff]  }
  0x2b   : > { %1874 = vmatpush3.bf16.msra.mxu0 %v2087_v35  ;;  %vm957_vm10 = vcmp.eq.s32.totalorder %v2438_v61, 1  ;;  %v972_v2 = vsel %vm956_vm9, 1, %v2185_v45  ;;  %v2093_v24 = vld [vmem:[%s2905_s4 + $0x44] ss:$16 sps:$4 sm:$0xff]   ;;  %vm1221_vm2 = vcmp.eq.s32.totalorder %v2389_v44, 2  ;;  %vm1222_vm3 = vcmp.eq.s32.totalorder %v2386_v43, 2 }
  0x2c   : > { %1923 = vmatprep.subr.bf16.mxu0 %v2374_v41  ;;  %v973_v3 = vsel %vm957_vm10, 1, %v2185_v45  ;;  %v2095_v30 = vld [vmem:[%s2905_s4 + $0x64] ss:$16 sps:$4 sm:$0xff]   ;;  %vm1223_vm4 = vcmp.eq.s32.totalorder %v2399_v48, 2  ;;  %vm1224_vm5 = vcmp.eq.s32.totalorder %v2402_v49, 2  ;;  %vm1225_vm6 = vcmp.eq.s32.totalorder %v2408_v50, 2 }
  0x2d   : > { %358 = vrot.lane.b32.xlu1 %v315_v33, %s2184_s16  ;;  %356 = vrot.lane.b32.xlu0 %v314_v34, %s2184_s16  ;;  %vm1226_vm7 = vcmp.eq.s32.totalorder %v2411_v51, 2  ;;  %vm1227_vm8 = vcmp.eq.s32.totalorder %v2420_v53, 2  ;;  %vm1228_vm9 = vcmp.eq.s32.totalorder %v2423_v54, 2  ;;  %vm1229_vm10 = vcmp.eq.s32.totalorder %v2435_v60, 2 }
  0x31   : > { %362 = vrot.lane.b32.xlu1 %v317_v36, %s2184_s16  ;;  %360 = vrot.lane.b32.xlu0 %v316_v37, %s2184_s16  ;;  %v2097_v36 = vld [vmem:[%s2905_s4 + $0x84] ss:$16 sps:$4 sm:$0xff]  }
  0x35   : > { %366 = vrot.lane.b32.xlu1 %v319_v38, %s2184_s16  ;;  %364 = vrot.lane.b32.xlu0 %v318_v39, %s2184_s16 }
  0x39   : > { %984 = vperm.xlu1 %2079, %v965_v46   ;;  %981 = vperm.xlu0 %2078, %v964_v47  }
  0x3d   : > { %987 = vperm.xlu1 %2079, %v966_v55   ;;  %990 = vperm.xlu0 %2078, %v967_v56  }
  0x41   : > { %993 = vperm.xlu1 %2079, %v968_v58   ;;  %996 = vperm.xlu0 %2078, %v969_v59   ;;  %v2100_v58 = vld [vmem:[%s2905_s4 + $0xc0] ss:$16 sps:$4 sm:$0xff]   ;;  %v2101_v59 = vld [vmem:[%s2905_s4 + $0xc4] ss:$16 sps:$4 sm:$0xff]  }
  0x42   : > { %1903 = vmatprep.subr.bf16.mxu1 %v2100_v58 }
  0x43   : > { %1904 = vmatpush3.bf16.msra.mxu1 %v2100_v58 }
  0x45   : > { %999 = vperm.xlu1 %2079, %v970_v62   ;;  %1002 = vperm.xlu0 %2078, %v971_v63   ;;  %v2491_v62 = vld [vmem:[%s2380_s7 + $0x50] sm:$0xff]  ;;  %v2494_v63 = vld [vmem:[%s2380_s7 + $0x58] sm:$0xff] }
  0x46   : > { %vm958_vm12 = vcmp.eq.s32.totalorder %v2491_v62, 1  ;;  %vm959_vm13 = vcmp.eq.s32.totalorder %v2494_v63, 1 }
  0x47   : > { %v974_v0 = vsel %vm958_vm12, 1, %v2185_v45  ;;  %v975_v1 = vsel %vm959_vm13, 1, %v2185_v45  ;;  %vm1231_vm12 = vcmp.eq.s32.totalorder %v2491_v62, 2  ;;  %vm1232_vm13 = vcmp.eq.s32.totalorder %v2494_v63, 2 }
  0x49   : > { %1005 = vperm.xlu1 %2079, %v972_v2   ;;  %1008 = vperm.xlu0 %2078, %v973_v3   ;;  %v2102_v2 = vld [vmem:[%s2905_s4 + $0xe0] ss:$16 sps:$4 sm:$0xff]   ;;  %v2103_v3 = vld [vmem:[%s2905_s4 + $0xe4] ss:$16 sps:$4 sm:$0xff]  }
  0x4a   : > { %1905 = vmatprep.subr.bf16.mxu1 %v2102_v2 }
  0x4b   : > { %1906 = vmatpush3.bf16.msra.mxu1 %v2102_v2 }
  0x4d   : > { %1011 = vperm.xlu1 %2079, %v974_v0   ;;  %1014 = vperm.xlu0 %2078, %v975_v1   ;;  %v2627_v1 = vld [vmem:[%s2905_s4 + $0x4c] ss:$16 sps:$4 sm:$0xff]  }
  0x8b   : > { %v341_v4 = vpop.permute.xlu1 %340  ;;  %v337_v5 = vpop.permute.xlu0 %336 }
  0x8c   : > { %387 = vst.msk [vmem:[#allocation2 + $0x10] sm:$0xff] %vm384_vm11, %v341_v4  ;;  %385 = vst.msk [vmem:[#allocation2] sm:$0xff] %vm384_vm11, %v337_v5  ;;  %v2507_v4 = vld [vmem:[%s2380_s7 + $0x60] sm:$0xff]  ;;  %v2510_v5 = vld [vmem:[%s2380_s7 + $0x68] sm:$0xff] }
  0x8d   : > { %vm960_vm14 = vcmp.eq.s32.totalorder %v2507_v4, 1  ;;  %vm961_vm15 = vcmp.eq.s32.totalorder %v2510_v5, 1 }
  0x8f   : > { %v343_v6 = vpop.permute.xlu1 %342  ;;  %v339_v7 = vpop.permute.xlu0 %338 }
  0x90   : > { %388 = vst.msk [vmem:[#allocation2 + $0x18] sm:$0xff] %vm384_vm11, %v343_v6  ;;  %386 = vst.msk [vmem:[#allocation2 + $0x8] sm:$0xff] %vm384_vm11, %v339_v7  ;;  %v976_v6 = vsel %vm960_vm14, 1, %v2185_v45  ;;  %v977_v7 = vsel %vm961_vm15, 1, %v2185_v45  ;;  %vm1233_vm14 = vcmp.eq.s32.totalorder %v2507_v4, 2  ;;  %vm1234_vm15 = vcmp.eq.s32.totalorder %v2510_v5, 2 }
  0x91   : > { %1017 = vperm.xlu1 %2079, %v976_v6   ;;  %1020 = vperm.xlu0 %2078, %v977_v7   ;;  %v2110_v6 = vld [vmem:[%s2905_s4 + $0x68] ss:$16 sps:$4 sm:$0xff]   ;;  %v2641_v7 = vld [vmem:[%s2905_s4 + $0x6c] ss:$16 sps:$4 sm:$0xff]  }
  0x93   : > { %v347_v8 = vpop.permute.xlu1 %346  ;;  %v345_v9 = vpop.permute.xlu0 %344  ;;  %v401_v10 = vld [vmem:[#allocation2] sm:$0xff]  ;;  %v403_v14 = vld [vmem:[#allocation2 + $0x10] sm:$0xff] }
  0x94   : > { %390 = vst.msk [vmem:[#allocation2 + $0x28] sm:$0xff] %vm384_vm11, %v347_v8  ;;  %389 = vst.msk [vmem:[#allocation2 + $0x20] sm:$0xff] %vm384_vm11, %v345_v9  ;;  %v2519_v8 = vld [vmem:[%s2905_s4 + $0x8] ss:$16 sps:$4 sm:$0xff]   ;;  %v2524_v9 = vld [vmem:[%s2905_s4 + $0xc] ss:$16 sps:$4 sm:$0xff]  }
  0x95   : > { %1955 = vmatprep.subr.bf16.mxu1 %v2519_v8 }
  0x97   : > { %v351_v11 = vpop.permute.xlu1 %350  ;;  %v349_v12 = vpop.permute.xlu0 %348  ;;  %v402_v13 = vld [vmem:[#allocation2 + $0x8] sm:$0xff]  ;;  %v404_v15 = vld [vmem:[#allocation2 + $0x18] sm:$0xff] }
  0x98   : > { %392 = vst.msk [vmem:[#allocation2 + $0x38] sm:$0xff] %vm384_vm11, %v351_v11  ;;  %391 = vst.msk [vmem:[#allocation2 + $0x30] sm:$0xff] %vm384_vm11, %v349_v12  ;;  %v417_v16 = vpack.c.bf16 %v402_v13, %v401_v10  ;;  %v418_v17 = vpack.c.bf16 %v404_v15, %v403_v14  ;;  %v2527_v10 = vld [vmem:[%s2380_s7 + $0x70] sm:$0xff]  ;;  %v2530_v11 = vld [vmem:[%s2380_s7 + $0x78] sm:$0xff]  ;;  %v1237_v14 = vsel %vm1221_vm2, 1, %v2185_v45  ;;  %v1238_v15 = vsel %vm1222_vm3, 1, %v2185_v45 }
  0x99   : > { %vm962_vm0 = vcmp.eq.s32.totalorder %v2527_v10, 1  ;;  %vm963_vm1 = vcmp.eq.s32.totalorder %v2530_v11, 1  ;;  %vm1494_vm2 = vcmp.eq.s32.totalorder %v2389_v44, 3  ;;  %vm1495_vm3 = vcmp.eq.s32.totalorder %v2386_v43, 3  ;;  %s1636_s7 = sshll.u32 %s2804_s13, 4  ;;  %s2853_s7 = int_to_ptr.vmem [resolvable:$true] %s1636_s7 }
  0x9a   : > { %1875 = vmatprep.mubr.bf16.mxu0 %v417_v16  ;;  %v978_v12 = vsel %vm962_vm0, 1, %v2185_v45  ;;  %v979_v13 = vsel %vm963_vm1, 1, %v2185_v45  ;;  %v1239_v16 = vsel %vm1223_vm4, 1, %v2185_v45  ;;  %vm1235_vm0 = vcmp.eq.s32.totalorder %v2527_v10, 2  ;;  %s2120_s11 = scalar_lea.vmem %s2853_s7, 2048  ;;  %p2127_p0 = scmp.lt.s32.totalorder %s2853_s7, %s2125_s14 }
  0x9b   : > { %1876 = vmatmul.mubr.bf16.vlgmr.msra.gmra.mrb[0].mxu0 %v418_v17  ;;  %v355_v19 = vpop.permute.xlu1 %354  ;;  %v353_v20 = vpop.permute.xlu0 %352  ;;  %v405_v21 = vld [vmem:[#allocation2 + $0x20] sm:$0xff]  ;;  %v406_v22 = vld [vmem:[#allocation2 + $0x28] sm:$0xff]  ;;  %1023 = vperm.xlu1 %2079, %v978_v12   ;;  %v1240_v17 = vsel %vm1224_vm5, 1, %v2185_v45  ;;  %vm1236_vm1 = vcmp.eq.s32.totalorder %v2530_v11, 2  ;;  %vm1496_vm4 = vcmp.eq.s32.totalorder %v2399_v48, 3  ;;  %vm1497_vm5 = vcmp.eq.s32.totalorder %v2402_v49, 3  ;;  %p2121_p11 = scmp.ne.s32.totalorder %s2853_s7, %s2120_s11  ;;  %p2128_p1 = scmp.lt.s32.totalorder %s2126_s15, %s2120_s11 }
  0x9c   : > { %394 = vst.msk [vmem:[#allocation2 + $0x48] sm:$0xff] %vm384_vm11, %v355_v19  ;;  %393 = vst.msk [vmem:[#allocation2 + $0x40] sm:$0xff] %vm384_vm11, %v353_v20  ;;  %v419_v23 = vpack.c.bf16 %v406_v22, %v405_v21  ;;  %1924 = vmatpush3.bf16.msra.mxu0 %v2374_v41  ;;  %1026 = vperm.xlu0 %2078, %v979_v13   ;;  %v1242_v19 = vsel %vm1226_vm7, 1, %v2185_v45  ;;  %v1243_v20 = vsel %vm1227_vm8, 1, %v2185_v45  ;;  %v1244_v21 = vsel %vm1228_vm9, 1, %v2185_v45 }
  0x9d   : > { %1925 = vmatprep.subr.bf16.mxu0 %v2091_v18  ;;  %v1245_v22 = vsel %vm1229_vm10, 1, %v2185_v45  ;;  %vm1499_vm7 = vcmp.eq.s32.totalorder %v2411_v51, 3  ;;  %vm1500_vm8 = vcmp.eq.s32.totalorder %v2420_v53, 3  ;;  %vm1501_vm9 = vcmp.eq.s32.totalorder %v2423_v54, 3  ;;  %v2112_v12 = vld [vmem:[%s2905_s4 + $0x88] ss:$16 sps:$4 sm:$0xff]   ;;  %p2122_p12 = pnand %p2121_p11, %p2257_p5  ;;  %p2129_p2 = por %p2128_p1, %p2127_p0 }
  0x9e   : > { %1879 = vmatprep.mubr.bf16.mxu0 %v419_v23  ;;  %v1515_v44 = vsel %vm1499_vm7, 1, %v2185_v45  ;;  %v1516_v48 = vsel %vm1500_vm8, 1, %v2185_v45  ;;  %v1517_v49 = vsel %vm1501_vm9, 1, %v2185_v45  ;;  %vm1502_vm10 = vcmp.eq.s32.totalorder %v2435_v60, 3 }
  0x9f   : > { %v359_v25 = vpop.permute.xlu1 %358  ;;  %v357_v26 = vpop.permute.xlu0 %356  ;;  %v407_v27 = vld [vmem:[#allocation2 + $0x30] sm:$0xff]  ;;  %v408_v28 = vld [vmem:[#allocation2 + $0x38] sm:$0xff]  ;;  %1254 = vperm.xlu1 %2079, %v1237_v14   ;;  %p2123_p13 = pneg %p2122_p12 }
  0xa0   : > { %396 = vst.msk [vmem:[#allocation2 + $0x58] sm:$0xff] %vm384_vm11, %v359_v25  ;;  %395 = vst.msk [vmem:[#allocation2 + $0x50] sm:$0xff] %vm384_vm11, %v357_v26  ;;  %v420_v29 = vpack.c.bf16 %v408_v28, %v407_v27  ;;  %1926 = vmatpush3.bf16.msra.mxu0 %v2091_v18  ;;  %1257 = vperm.xlu0 %2078, %v1238_v15   ;;  %v1241_v18 = vsel %vm1225_vm6, 1, %v2185_v45  ;;  %v1248_v25 = vsel %vm1232_vm13, 1, %v2185_v45  ;;  %v1249_v26 = vsel %vm1233_vm14, 1, %v2185_v45 }
  0xa1   : > { %1927 = vmatprep.subr.bf16.mxu0 %v2093_v24  ;;  %v1250_v27 = vsel %vm1234_vm15, 1, %v2185_v45  ;;  %v1251_v28 = vsel %vm1235_vm0, 1, %v2185_v45  ;;  %vm1498_vm6 = vcmp.eq.s32.totalorder %v2408_v50, 3  ;;  %v1518_v50 = vsel %vm1502_vm10, 1, %v2185_v45  ;;  %p2130_p3 = pnand %p2129_p2, %p2123_p13 }
  0xa2   : > { %v1514_v43 = vsel %vm1498_vm6, 1, %v2185_v45  ;;  %vm1505_vm13 = vcmp.eq.s32.totalorder %v2494_v63, 3  ;;  %vm1506_vm14 = vcmp.eq.s32.totalorder %v2507_v4, 3  ;;  %vm1507_vm15 = vcmp.eq.s32.totalorder %v2510_v5, 3 }
  0xa3   : > { %1880 = vmatmul.mubr.bf16.gmra.mrb[4].mxu0 %v420_v29  ;;  %v363_v31 = vpop.permute.xlu1 %362  ;;  %v361_v32 = vpop.permute.xlu0 %360  ;;  %v409_v33 = vld [vmem:[#allocation2 + $0x40] sm:$0xff]  ;;  %v410_v34 = vld [vmem:[#allocation2 + $0x48] sm:$0xff]  ;;  %1260 = vperm.xlu1 %2079, %v1239_v16   ;;  %v1252_v29 = vsel %vm1236_vm1, 1, %v2185_v45  ;;  %v1521_v54 = vsel %vm1505_vm13, 1, %v2185_v45  ;;  %v1522_v60 = vsel %vm1506_vm14, 1, %v2185_v45  ;;  %vm1508_vm0 = vcmp.eq.s32.totalorder %v2527_v10, 3 }
  0xa4   : > { %398 = vst.msk [vmem:[#allocation2 + $0x68] sm:$0xff] %vm384_vm11, %v363_v31  ;;  %397 = vst.msk [vmem:[#allocation2 + $0x60] sm:$0xff] %vm384_vm11, %v361_v32  ;;  %v421_v35 = vpack.c.bf16 %v410_v34, %v409_v33  ;;  %1928 = vmatpush3.bf16.msra.mxu0 %v2093_v24  ;;  %1263 = vperm.xlu0 %2078, %v1240_v17   ;;  %v1247_v24 = vsel %vm1231_vm12, 1, %v2185_v45  ;;  %v1511_v31 = vsel %vm1495_vm3, 1, %v2185_v45  ;;  %v1512_v32 = vsel %vm1496_vm4, 1, %v2185_v45 }
  0xa5   : > { %1929 = vmatprep.subr.bf16.mxu0 %v2095_v30  ;;  %v1513_v33 = vsel %vm1497_vm5, 1, %v2185_v45  ;;  %vm1504_vm12 = vcmp.eq.s32.totalorder %v2491_v62, 3  ;;  %vm1509_vm1 = vcmp.eq.s32.totalorder %v2530_v11, 3  ;;  %v1524_v34 = vsel %vm1508_vm0, 1, %v2185_v45  ;;  %v2655_v16 = vld [vmem:[%s2905_s4 + $0x8c] ss:$16 sps:$4 sm:$0xff]  }
  0xa6   : > { %1883 = vmatprep.mubr.bf16.mxu0 %v421_v35  ;;  %v1520_v53 = vsel %vm1504_vm12, 1, %v2185_v45  ;;  %v1525_v35 = vsel %vm1509_vm1, 1, %v2185_v45 }
  0xa7   : > { %v367_v37 = vpop.permute.xlu1 %366  ;;  %v365_v38 = vpop.permute.xlu0 %364  ;;  %v411_v39 = vld [vmem:[#allocation2 + $0x50] sm:$0xff]  ;;  %v412_v40 = vld [vmem:[#allocation2 + $0x58] sm:$0xff]  ;;  %1266 = vperm.xlu1 %2079, %v1241_v18  }
  0xa8   : > { %400 = vst.msk [vmem:[#allocation2 + $0x78] sm:$0xff] %vm384_vm11, %v367_v37  ;;  %399 = vst.msk [vmem:[#allocation2 + $0x70] sm:$0xff] %vm384_vm11, %v365_v38  ;;  %v422_v41 = vpack.c.bf16 %v412_v40, %v411_v39  ;;  %1930 = vmatpush3.bf16.msra.mxu0 %v2095_v30  ;;  %1269 = vperm.xlu0 %2078, %v1242_v19   ;;  %vm1230_vm11 = vcmp.eq.s32.totalorder %v2438_v61, 2  ;;  %v1510_v30 = vsel %vm1494_vm2, 1, %v2185_v45 }
  0xa9   : > { %1931 = vmatprep.subr.bf16.mxu0 %v2097_v36  ;;  %v1246_v23 = vsel %vm1230_vm11, 1, %v2185_v45  ;;  %vm1503_vm11 = vcmp.eq.s32.totalorder %v2438_v61, 3  ;;  %v1523_v61 = vsel %vm1507_vm15, 1, %v2185_v45 }
  0xaa   : > { %v1519_v51 = vsel %vm1503_vm11, 1, %v2185_v45  ;;  %v2612_v45 = vld [vmem:[%s2905_s4 + $0x2c] ss:$16 sps:$4 sm:$0xff]  }
  0xab   : > { %1884 = vmatmul.mubr.bf16.gmra.mrb[8].mxu0 %v422_v41  ;;  %v413_v46 = vld [vmem:[#allocation2 + $0x60] sm:$0xff]  ;;  %v414_v47 = vld [vmem:[#allocation2 + $0x68] sm:$0xff]  ;;  %1272 = vperm.xlu1 %2079, %v1243_v20  }
  0xac   : > { %v423_v52 = vpack.c.bf16 %v414_v47, %v413_v46  ;;  %1932 = vmatpush3.bf16.msra.mxu0 %v2097_v36  ;;  %1275 = vperm.xlu0 %2078, %v1244_v21   ;;  %v2114_v21 = vld [vmem:[%s2905_s4 + $0xa8] ss:$16 sps:$4 sm:$0xff]  }
  0xad   : > { %1933 = vmatprep.subr.bf16.mxu0 %v2099_v42 }
  0xae   : > { %1887 = vmatprep.mubr.bf16.mxu0 %v423_v52 }
  0xaf   : > { %v415_v55 = vld [vmem:[#allocation2 + $0x70] sm:$0xff]  ;;  %v416_v56 = vld [vmem:[#allocation2 + $0x78] sm:$0xff]  ;;  %1278 = vperm.xlu1 %2079, %v1245_v22  }
  0xb0   : > { %v424_v57 = vpack.c.bf16 %v416_v56, %v415_v55  ;;  %1934 = vmatpush3.bf16.msra.mxu0 %v2099_v42  ;;  %1281 = vperm.xlu0 %2078, %v1246_v23   ;;  %v2106_v55 = vld [vmem:[%s2905_s4 + $0x28] ss:$16 sps:$4 sm:$0xff]   ;;  %v2115_v22 = vld [vmem:[%s2905_s4 + $0xac] ss:$16 sps:$4 sm:$0xff]  }
  0xb1   : > { %1935 = vmatprep.subr.bf16.mxu0 %v2101_v59 }
  0xb3   : > { %1888 = vmatmul.mubr.bf16.gmra.mrb[12].mxu0 %v424_v57  ;;  %1284 = vperm.xlu1 %2079, %v1247_v24  }
  0xb4   : > { %1936 = vmatpush3.bf16.msra.mxu0 %v2101_v59  ;;  %1287 = vperm.xlu0 %2078, %v1248_v25   ;;  %v2108_v59 = vld [vmem:[%s2905_s4 + $0x48] ss:$16 sps:$4 sm:$0xff]  }
  0xb5   : > { %1937 = vmatprep.subr.bf16.mxu0 %v2103_v3 }
  0xb7   : > { %1290 = vperm.xlu1 %2079, %v1249_v26   ;;  %v2116_v26 = vld [vmem:[%s2905_s4 + $0xc8] ss:$16 sps:$4 sm:$0xff]  }
  0xb8   : > { %1938 = vmatpush3.bf16.msra.mxu0 %v2103_v3  ;;  %1293 = vperm.xlu0 %2078, %v1250_v27  }
  0xb9   : > { %1987 = vmatprep.subr.bf16.mxu0 %v2524_v9 }
  0xbb   : > { %1296 = vperm.xlu1 %2079, %v1251_v28  }
  0xbc   : > { %1299 = vperm.xlu0 %2078, %v1252_v29  }
  0xbf   : > { %1527 = vperm.xlu1 %2079, %v1510_v30   ;;  %v2117_v30 = vld [vmem:[%s2905_s4 + $0xcc] ss:$16 sps:$4 sm:$0xff]  }
  0xc0   : > { %1530 = vperm.xlu0 %2078, %v1511_v31  }
  0xc3   : > { %1533 = vperm.xlu1 %2079, %v1512_v32  }
  0xc4   : > { %1536 = vperm.xlu0 %2078, %v1513_v33  }
  0xc7   : > { %1539 = vperm.xlu1 %2079, %v1514_v43  }
  0xc8   : > { %1542 = vperm.xlu0 %2078, %v1515_v44   ;;  %v2118_v44 = vld [vmem:[%s2905_s4 + $0xe8] ss:$16 sps:$4 sm:$0xff]  }
  0xcb   : > { %1545 = vperm.xlu1 %2079, %v1516_v48   ;;  %v2119_v48 = vld [vmem:[%s2905_s4 + $0xec] ss:$16 sps:$4 sm:$0xff]  }
  0xcc   : > { %1548 = vperm.xlu0 %2078, %v1517_v49   ;;  %v982_v49 = vpop.permute.xlu0 %981 }
  0xcd   : > { %vm1028_vm3 = vcmp.eq.s32.totalorder %v982_v49, 1 }
  0xcf   : > { %1551 = vperm.xlu1 %2079, %v1518_v50  }
  0xd0   : > { %1554 = vperm.xlu0 %2078, %v1519_v51   ;;  %v991_v51 = vpop.permute.xlu0 %990 }
  0xd1   : > { %vm1031_vm4 = vcmp.eq.s32.totalorder %v991_v51, 1 }
  0xd3   : > { %1557 = vperm.xlu1 %2079, %v1520_v53  }
  0xd4   : > { %1560 = vperm.xlu0 %2078, %v1521_v54   ;;  %v997_v54 = vpop.permute.xlu0 %996 }
  0xd5   : > { %vm1033_vm9 = vcmp.eq.s32.totalorder %v997_v54, 1 }
  0xd7   : > { %1563 = vperm.xlu1 %2079, %v1522_v60  }
  0xd8   : > { %1566 = vperm.xlu0 %2078, %v1523_v61   ;;  %v1003_v61 = vpop.permute.xlu0 %1002 }
  0xd9   : > { %vm1035_vm8 = vcmp.eq.s32.totalorder %v1003_v61, 1 }
  0xdb   : > { %1569 = vperm.xlu1 %2079, %v1524_v34  }
  0xdc   : > { %1572 = vperm.xlu0 %2078, %v1525_v35   ;;  %v2710_v35 = vpop.permute.xlu0 %1008 }
  0xdd   : > { %vm1037_vm13 = vcmp.eq.s32.totalorder %v2710_v35, 1 }
 0x16e   : > { %v1877_v36 = vpop.f32.mrb[0].mxu0 }
 0x16f   : > { %v523_v37 = vpop.f32.mrb[1].mxu0  ;;  %v588_v39 = vmax.f32 %v1877_v36, 0.0 }
 0x170   : > { %v1878_v38 = vpop.f32.mrb[2].mxu0  ;;  %v586_v42 = vmax.f32 %v523_v37, 0.0  ;;  %v2712_v37 = vpop.permute.xlu0 %1014 }
 0x171   : > { %v589_v40 = vmax.f32 %v1878_v38, 0.0  ;;  %v526_v41 = vpop.f32.mrb[3].mxu0  ;;  %vm1039_vm12 = vcmp.eq.s32.totalorder %v2712_v37, 1 }
 0x172   : > { %v587_v46 = vmax.f32 %v526_v41, 0.0 }
 0x173   : > { %v2602_v47 = vpack.c.bf16 %v589_v40, %v588_v39 }
 0x174   : > { %v2604_v52 = vpack.c.bf16 %v587_v46, %v586_v42  ;;  %v2716_v39 = vpop.permute.xlu0 %1020 }
 0x175   : > { %vm1041_vm1 = vcmp.eq.s32.totalorder %v2716_v39, 1 }
 0x176   : > { %v1881_v56 = vpop.f32.mrb[4].mxu0  ;;  %1907 = vmatprep.mubr.bf16.mxu1 %v2604_v52  ;;  %1939 = vmatprep.mubr.bf16.mxu0 %v2604_v52 }
 0x177   : > { %v539_v57 = vpop.f32.mrb[5].mxu0  ;;  %1908 = vmatmul.mubr.bf16.vlgmr.msra.gmra.mrb[0].mxu1 %v2602_v47  ;;  %1940 = vmatmul.mubr.bf16.vlgmr.msra.gmra.mrb[16].mxu0 %v2602_v47  ;;  %v592_v62 = vmax.f32 %v1881_v56, 0.0 }
 0x178   : > { %1956 = vmatpush3.bf16.msra.mxu1 %v2519_v8  ;;  %v1882_v58 = vpop.f32.mrb[6].mxu0  ;;  %1988 = vmatpush3.bf16.msra.mxu0 %v2524_v9  ;;  %v590_v2 = vmax.f32 %v539_v57, 0.0  ;;  %v2720_v41 = vpop.permute.xlu0 %1026 }
 0x179   : > { %v593_v63 = vmax.f32 %v1882_v58, 0.0  ;;  %v542_v0 = vpop.f32.mrb[7].mxu0  ;;  %1957 = vmatprep.subr.bf16.mxu1 %v2106_v55  ;;  %1989 = vmatprep.subr.bf16.mxu0 %v2612_v45  ;;  %vm1043_vm0 = vcmp.eq.s32.totalorder %v2720_v41, 1 }
 0x17a   : > { %v591_v3 = vmax.f32 %v542_v0, 0.0 }
 0x17b   : > { %v2629_v4 = vpack.c.bf16 %v593_v63, %v592_v62 }
 0x17c   : > { %v2631_v5 = vpack.c.bf16 %v591_v3, %v590_v2  ;;  %1958 = vmatpush3.bf16.msra.mxu1 %v2106_v55  ;;  %1990 = vmatpush3.bf16.msra.mxu0 %v2612_v45  ;;  %v2724_v46 = vpop.permute.xlu0 %1257 }
 0x17d   : > { %1959 = vmatprep.subr.bf16.mxu1 %v2108_v59  ;;  %1991 = vmatprep.subr.bf16.mxu0 %v2627_v1 }
 0x17e   : > { %v1885_v8 = vpop.f32.mrb[8].mxu0  ;;  %1911 = vmatprep.mubr.bf16.mxu1 %v2631_v5  ;;  %1943 = vmatprep.mubr.bf16.mxu0 %v2631_v5 }
 0x17f   : > { %v555_v10 = vpop.f32.mrb[9].mxu0  ;;  %1912 = vmatmul.mubr.bf16.gmra.mrb[4].mxu1 %v2629_v4  ;;  %1944 = vmatmul.mubr.bf16.gmra.mrb[20].mxu0 %v2629_v4  ;;  %v596_v13 = vmax.f32 %v1885_v8, 0.0 }
 0x180   : > { %1960 = vmatpush3.bf16.msra.mxu1 %v2108_v59  ;;  %v1886_v11 = vpop.f32.mrb[10].mxu0  ;;  %1992 = vmatpush3.bf16.msra.mxu0 %v2627_v1  ;;  %v594_v17 = vmax.f32 %v555_v10, 0.0 }
 0x181   : > { %v597_v14 = vmax.f32 %v1886_v11, 0.0  ;;  %v558_v15 = vpop.f32.mrb[11].mxu0  ;;  %1961 = vmatprep.subr.bf16.mxu1 %v2110_v6  ;;  %1993 = vmatprep.subr.bf16.mxu0 %v2641_v7 }
 0x182   : > { %v595_v18 = vmax.f32 %v558_v15, 0.0 }
 0x183   : > { %v2657_v19 = vpack.c.bf16 %v597_v14, %v596_v13 }
 0x184   : > { %v2659_v20 = vpack.c.bf16 %v595_v18, %v594_v17  ;;  %1962 = vmatpush3.bf16.msra.mxu1 %v2110_v6  ;;  %1994 = vmatpush3.bf16.msra.mxu0 %v2641_v7 }
 0x185   : > { %1963 = vmatprep.subr.bf16.mxu1 %v2112_v12  ;;  %1995 = vmatprep.subr.bf16.mxu0 %v2655_v16 }
 0x186   : > { %v1889_v23 = vpop.f32.mrb[12].mxu0  ;;  %1915 = vmatprep.mubr.bf16.mxu1 %v2659_v20  ;;  %1947 = vmatprep.mubr.bf16.mxu0 %v2659_v20 }
 0x187   : > { %v571_v24 = vpop.f32.mrb[13].mxu0  ;;  %1916 = vmatmul.mubr.bf16.gmra.mrb[8].mxu1 %v2657_v19  ;;  %1948 = vmatmul.mubr.bf16.gmra.mrb[24].mxu0 %v2657_v19  ;;  %v600_v27 = vmax.f32 %v1889_v23, 0.0 }
 0x188   : > { %1964 = vmatpush3.bf16.msra.mxu1 %v2112_v12  ;;  %v1890_v25 = vpop.f32.mrb[14].mxu0  ;;  %1996 = vmatpush3.bf16.msra.mxu0 %v2655_v16  ;;  %v598_v31 = vmax.f32 %v571_v24, 0.0 }
 0x189   : > { %v601_v28 = vmax.f32 %v1890_v25, 0.0  ;;  %v574_v29 = vpop.f32.mrb[15].mxu0  ;;  %1965 = vmatprep.subr.bf16.mxu1 %v2114_v21  ;;  %1997 = vmatprep.subr.bf16.mxu0 %v2115_v22 }
 0x18a   : > { %v599_v32 = vmax.f32 %v574_v29, 0.0 }
 0x18b   : > { %v609_v33 = vpack.c.bf16 %v601_v28, %v600_v27 }
 0x18c   : > { %v608_v43 = vpack.c.bf16 %v599_v32, %v598_v31  ;;  %1966 = vmatpush3.bf16.msra.mxu1 %v2114_v21  ;;  %1998 = vmatpush3.bf16.msra.mxu0 %v2115_v22 }
 0x18d   : > { %1967 = vmatprep.subr.bf16.mxu1 %v2116_v26  ;;  %1999 = vmatprep.subr.bf16.mxu0 %v2117_v30 }
 0x18e   : > { %1919 = vmatprep.mubr.bf16.mxu1 %v608_v43  ;;  %1951 = vmatprep.mubr.bf16.mxu0 %v608_v43 }
 0x18f   : > { %1920 = vmatmul.mubr.bf16.gmra.mrb[12].mxu1 %v609_v33  ;;  %1952 = vmatmul.mubr.bf16.gmra.mrb[28].mxu0 %v609_v33 }
 0x190   : > { %1968 = vmatpush3.bf16.msra.mxu1 %v2116_v26  ;;  %1971 = vmatprep.mubr.bf16.mxu1 %v2604_v52 }
 0x191   : > { %2000 = vmatpush3.bf16.msra.mxu0 %v2117_v30  ;;  %2003 = vmatprep.mubr.bf16.mxu0 %v2604_v52  ;;  %v2728_v52 = vpop.permute.xlu0 %1263 }
 0x192   : > { %1969 = vmatprep.subr.bf16.mxu1 %v2118_v44  ;;  %2001 = vmatprep.subr.bf16.mxu0 %v2119_v48 }
 0x194   : > { %1970 = vmatpush3.bf16.msra.mxu1 %v2118_v44 }
 0x195   : > { %2002 = vmatpush3.bf16.msra.mxu0 %v2119_v48  ;;  %2019 = vmatprep.subr.bf16.mxu1 %v2524_v9 }
 0x197   : > { %1972 = vmatmul.mubr.bf16.vlgmr.msra.gmra.mrb[16].mxu1 %v2602_v47 }
 0x198   : > { %2027 = vmatpush3.bf16.msra.mxu1 %v2524_v9  ;;  %2004 = vmatmul.mubr.bf16.vlgmr.msra.gmra.mrb[32].mxu0 %v2602_v47  ;;  %v985_v9 = vpop.permute.xlu1 %984 }
 0x199   : > { %1975 = vmatprep.mubr.bf16.mxu1 %v2631_v5  ;;  %2007 = vmatprep.mubr.bf16.mxu0 %v2631_v5  ;;  %vm1029_vm5 = vcmp.eq.s32.totalorder %v985_v9, 1 }
 0x19a   : > { %2020 = vmatprep.subr.bf16.mxu1 %v2612_v45 }
 0x19c   : > { %2028 = vmatpush3.bf16.msra.mxu1 %v2612_v45  ;;  %v988_v50 = vpop.permute.xlu1 %987  ;;  %v2732_v45 = vpop.permute.xlu0 %1269 }
 0x19d   : > { %2021 = vmatprep.subr.bf16.mxu1 %v2627_v1  ;;  %vm1030_vm2 = vcmp.eq.s32.totalorder %v988_v50, 1 }
 0x19f   : > { %1976 = vmatmul.mubr.bf16.gmra.mrb[20].mxu1 %v2629_v4 }
 0x1a0   : > { %2029 = vmatpush3.bf16.msra.mxu1 %v2627_v1  ;;  %2008 = vmatmul.mubr.bf16.gmra.mrb[36].mxu0 %v2629_v4  ;;  %v994_v53 = vpop.permute.xlu1 %993  ;;  %v2736_v57 = vpop.permute.xlu0 %1275 }
 0x1a1   : > { %1979 = vmatprep.mubr.bf16.mxu1 %v2659_v20  ;;  %2022 = vmatprep.subr.bf16.mxu1 %v2641_v7  ;;  %vm1032_vm7 = vcmp.eq.s32.totalorder %v994_v53, 1 }
 0x1a4   : > { %2030 = vmatpush3.bf16.msra.mxu1 %v2641_v7  ;;  %v1000_v60 = vpop.permute.xlu1 %999  ;;  %v2740_v59 = vpop.permute.xlu0 %1281 }
 0x1a5   : > { %2023 = vmatprep.subr.bf16.mxu1 %v2655_v16  ;;  %vm1034_vm6 = vcmp.eq.s32.totalorder %v1000_v60, 1 }
 0x1a7   : > { %1980 = vmatmul.mubr.bf16.gmra.mrb[24].mxu1 %v2657_v19 }
 0x1a8   : > { %2031 = vmatpush3.bf16.msra.mxu1 %v2655_v16  ;;  %1983 = vmatprep.mubr.bf16.mxu1 %v608_v43  ;;  %v2708_v34 = vpop.permute.xlu1 %1005  ;;  %v2744_v63 = vpop.permute.xlu0 %1287 }
 0x1a9   : > { %2024 = vmatprep.subr.bf16.mxu1 %v2115_v22  ;;  %vm1036_vm11 = vcmp.eq.s32.totalorder %v2708_v34, 1 }
 0x1ac   : > { %2032 = vmatpush3.bf16.msra.mxu1 %v2115_v22  ;;  %v1012_v36 = vpop.permute.xlu1 %1011  ;;  %v2748_v1 = vpop.permute.xlu0 %1293 }
 0x1ad   : > { %2025 = vmatprep.subr.bf16.mxu1 %v2117_v30  ;;  %vm1038_vm10 = vcmp.eq.s32.totalorder %v1012_v36, 1 }
 0x1af   : > { %1984 = vmatmul.mubr.bf16.gmra.mrb[28].mxu1 %v609_v33 }
 0x1b0   : > { %2033 = vmatpush3.bf16.msra.mxu1 %v2117_v30  ;;  %2011 = vmatprep.mubr.bf16.mxu1 %v2659_v20  ;;  %v2714_v38 = vpop.permute.xlu1 %1017  ;;  %v2760_v16 = vpop.permute.xlu0 %1299 }
 0x1b1   : > { %2026 = vmatprep.subr.bf16.mxu1 %v2119_v48  ;;  %vm1040_vm15 = vcmp.eq.s32.totalorder %v2714_v38, 1 }
 0x1b4   : > { %2034 = vmatpush3.bf16.msra.mxu1 %v2119_v48  ;;  %v2718_v40 = vpop.permute.xlu1 %1023  ;;  %v2770_v30 = vpop.permute.xlu0 %1530 }
 0x1b5   : > { %vm1042_vm14 = vcmp.eq.s32.totalorder %v2718_v40, 1 }
 0x1b7   : > { %2012 = vmatmul.mubr.bf16.vlgmr.msra.gmra.mrb[32].mxu1 %v2657_v19 }
 0x1b8   : > { %2015 = vmatprep.mubr.bf16.mxu1 %v608_v43  ;;  %v2722_v42 = vpop.permute.xlu1 %1254  ;;  %v1537_v61 = vpop.permute.xlu0 %1536 }
 0x1bc   : > { %v2726_v47 = vpop.permute.xlu1 %1260 }
 0x1bf   : > { %2016 = vmatmul.mubr.bf16.gmra.mrb[36].mxu1 %v609_v33 }
 0x1c0   : > { %v2730_v55 = vpop.permute.xlu1 %1266 }
 0x1c4   : > { %v2734_v56 = vpop.permute.xlu1 %1272 }
 0x1c8   : > { %v2738_v58 = vpop.permute.xlu1 %1278 }
 0x1cc   : > { %v2742_v62 = vpop.permute.xlu1 %1284 }
 0x1d0   : > { %v2746_v0 = vpop.permute.xlu1 %1290 }
 0x1d4   : > { %v2758_v15 = vpop.permute.xlu1 %1296 }
 0x1d8   : > { %v1528_v29 = vpop.permute.xlu1 %1527 }
 0x1dc   : > { %v1534_v60 = vpop.permute.xlu1 %1533 }
 0x1e0   : > { %v1540_v38 = vpop.permute.xlu1 %1539 }
 0x24a   : > { %v1909_v2 = vpop.f32.mrb[0].mxu1  ;;  %v1941_v3 = vpop.f32.mrb[16].mxu0 }
 0x24b   : > { %v2750_v4 = vsel %vm1030_vm2, %v1941_v3, %v1909_v2  ;;  %v724_v5 = vpop.f32.mrb[1].mxu1  ;;  %v885_v6 = vpop.f32.mrb[17].mxu0  ;;  %vm1303_vm2 = vcmp.eq.s32.totalorder %v2726_v47, 1 }
 0x24c   : > { %v2752_v7 = vsel %vm1028_vm3, %v885_v6, %v724_v5  ;;  %v1910_v8 = vpop.f32.mrb[2].mxu1  ;;  %v1942_v10 = vpop.f32.mrb[18].mxu0  ;;  %vm1301_vm3 = vcmp.eq.s32.totalorder %v2722_v42, 1 }
 0x24d   : > { %v2754_v11 = vsel %vm1031_vm4, %v1942_v10, %v1910_v8  ;;  %v727_v12 = vpop.f32.mrb[3].mxu1  ;;  %v888_v13 = vpop.f32.mrb[19].mxu0  ;;  %vm1576_vm4 = vcmp.eq.s32.totalorder %v1534_v60, 1 }
 0x24e   : > { %v2756_v14 = vsel %vm1029_vm5, %v888_v13, %v727_v12  ;;  %v1543_v13 = vpop.permute.xlu0 %1542  ;;  %vm1304_vm5 = vcmp.eq.s32.totalorder %v2728_v52, 1 }
 0x252   : > { %v1913_v17 = vpop.f32.mrb[4].mxu1  ;;  %v1945_v18 = vpop.f32.mrb[20].mxu0 }
 0x253   : > { %v2762_v19 = vsel %vm1034_vm6, %v1945_v18, %v1913_v17  ;;  %v740_v20 = vpop.f32.mrb[5].mxu1  ;;  %v901_v21 = vpop.f32.mrb[21].mxu0  ;;  %vm1574_vm6 = vcmp.eq.s32.totalorder %v1528_v29, 1 }
 0x254   : > { %v2764_v22 = vsel %vm1032_vm7, %v901_v21, %v740_v20  ;;  %v1914_v23 = vpop.f32.mrb[6].mxu1  ;;  %v1946_v24 = vpop.f32.mrb[22].mxu0  ;;  %vm1302_vm7 = vcmp.eq.s32.totalorder %v2724_v46, 1 }
 0x255   : > { %v2766_v25 = vsel %vm1035_vm8, %v1946_v24, %v1914_v23  ;;  %v743_v26 = vpop.f32.mrb[7].mxu1  ;;  %v904_v27 = vpop.f32.mrb[23].mxu0  ;;  %vm1577_vm8 = vcmp.eq.s32.totalorder %v1537_v61, 1 }
 0x256   : > { %v2768_v28 = vsel %vm1033_vm9, %v904_v27, %v743_v26  ;;  %vm1575_vm9 = vcmp.eq.s32.totalorder %v2770_v30, 1  ;;  %v1546_v29 = vpop.permute.xlu1 %1545 }
 0x25a   : > { %v1917_v31 = vpop.f32.mrb[8].mxu1  ;;  %v1949_v32 = vpop.f32.mrb[24].mxu0 }
 0x25b   : > { %v2773_v33 = vsel %vm1038_vm10, %v1949_v32, %v1917_v31  ;;  %v756_v43 = vpop.f32.mrb[9].mxu1  ;;  %v917_v44 = vpop.f32.mrb[25].mxu0  ;;  %vm1307_vm10 = vcmp.eq.s32.totalorder %v2734_v56, 1 }
 0x25c   : > { %v2776_v48 = vsel %vm1036_vm11, %v917_v44, %v756_v43  ;;  %v1918_v9 = vpop.f32.mrb[10].mxu1  ;;  %v1950_v49 = vpop.f32.mrb[26].mxu0  ;;  %vm1305_vm11 = vcmp.eq.s32.totalorder %v2730_v55, 1 }
 0x25d   : > { %v2779_v50 = vsel %vm1039_vm12, %v1950_v49, %v1918_v9  ;;  %v759_v51 = vpop.f32.mrb[11].mxu1  ;;  %v920_v53 = vpop.f32.mrb[27].mxu0  ;;  %vm1580_vm12 = vcmp.eq.s32.totalorder %v1546_v29, 1 }
 0x25e   : > { %v2781_v54 = vsel %vm1037_vm13, %v920_v53, %v759_v51  ;;  %v1549_v31 = vpop.permute.xlu0 %1548  ;;  %vm1308_vm13 = vcmp.eq.s32.totalorder %v2736_v57, 1 }
 0x262   : > { %v1921_v34 = vpop.f32.mrb[12].mxu1  ;;  %v1953_v36 = vpop.f32.mrb[28].mxu0 }
 0x263   : > { %v2785_v37 = vsel %vm1042_vm14, %v1953_v36, %v1921_v34  ;;  %v772_v2 = vpop.f32.mrb[13].mxu1  ;;  %v933_v35 = vpop.f32.mrb[29].mxu0  ;;  %vm1578_vm14 = vcmp.eq.s32.totalorder %v1540_v38, 1 }
 0x264   : > { %v2788_v3 = vsel %vm1040_vm15, %v933_v35, %v772_v2  ;;  %v1922_v5 = vpop.f32.mrb[14].mxu1  ;;  %v1954_v6 = vpop.f32.mrb[30].mxu0  ;;  %vm1306_vm15 = vcmp.eq.s32.totalorder %v2732_v45, 1 }
 0x265   : > { %v2792_v8 = vsel %vm1043_vm0, %v1954_v6, %v1922_v5  ;;  %v775_v40 = vpop.f32.mrb[15].mxu1  ;;  %v936_v10 = vpop.f32.mrb[31].mxu0  ;;  %vm1581_vm0 = vcmp.eq.s32.totalorder %v1549_v31, 1 }
 0x266   : > { %v2794_v12 = vsel %vm1041_vm1, %v936_v10, %v775_v40  ;;  %vm1579_vm1 = vcmp.eq.s32.totalorder %v1543_v13, 1 }
 0x26a   : > { %v1973_v41 = vpop.f32.mrb[16].mxu1 }
 0x26b   : > { %v1319_v17 = vsel %vm1303_vm2, %v1973_v41, %v2750_v4  ;;  %v2005_v18 = vpop.f32.mrb[32].mxu0  ;;  %v1158_v39 = vpop.f32.mrb[17].mxu1  ;;  %vm1311_vm2 = vcmp.eq.s32.totalorder %v2742_v62, 1 }
 0x26c   : > { %v1592_v20 = vsel %vm1576_vm4, %v2005_v18, %v1319_v17  ;;  %v1317_v21 = vsel %vm1301_vm3, %v1158_v39, %v2752_v7  ;;  %v1431_v23 = vpop.f32.mrb[33].mxu0  ;;  %v1974_v24 = vpop.f32.mrb[18].mxu1  ;;  %vm1309_vm3 = vcmp.eq.s32.totalorder %v2738_v58, 1  ;;  %vm1312_vm4 = vcmp.eq.s32.totalorder %v2744_v63, 1 }
 0x26d   : > { %1608 = vst [vmem:[%s2804_s13 + $0x10] sm:$0xff] %v1592_v20  ;;  %v1590_v42 = vsel %vm1574_vm6, %v1431_v23, %v1317_v21  ;;  %v1320_v47 = vsel %vm1304_vm5, %v1974_v24, %v2754_v11  ;;  %v2006_v52 = vpop.f32.mrb[34].mxu0  ;;  %v1161_v4 = vpop.f32.mrb[19].mxu1  ;;  %vm1310_vm5 = vcmp.eq.s32.totalorder %v2740_v59, 1  ;;  %vm1315_vm6 = vcmp.eq.s32.totalorder %v2758_v15, 1 }
 0x26e   : > { %1606 = vst [vmem:[%s2804_s13] sm:$0xff] %v1590_v42  ;;  %v1593_v7 = vsel %vm1577_vm8, %v2006_v52, %v1320_v47  ;;  %v1318_v26 = vsel %vm1302_vm7, %v1161_v4, %v2756_v14  ;;  %v1434_v46 = vpop.f32.mrb[35].mxu0  ;;  %v1555_v62 = vpop.permute.xlu0 %1554  ;;  %vm1313_vm7 = vcmp.eq.s32.totalorder %v2746_v0, 1  ;;  %vm1316_vm8 = vcmp.eq.s32.totalorder %v2760_v16, 1 }
 0x26f   : > { %1609 = vst [vmem:[%s2804_s13 + $0x18] sm:$0xff] %v1593_v7  ;;  %v1591_v27 = vsel %vm1575_vm9, %v1434_v46, %v1318_v26  ;;  %vm1314_vm9 = vcmp.eq.s32.totalorder %v2748_v1, 1 }
 0x270   : > { %1607 = vst [vmem:[%s2804_s13 + $0x8] sm:$0xff] %v1591_v27 }
 0x272   : > { %v1977_v32 = vpop.f32.mrb[20].mxu1 }
 0x273   : > { %v1323_v11 = vsel %vm1307_vm10, %v1977_v32, %v2762_v19  ;;  %v2009_v30 = vpop.f32.mrb[36].mxu0  ;;  %v1174_v43 = vpop.f32.mrb[21].mxu1 }
 0x274   : > { %v1596_v14 = vsel %vm1580_vm12, %v2009_v30, %v1323_v11  ;;  %v1321_v44 = vsel %vm1305_vm11, %v1174_v43, %v2764_v22  ;;  %v1447_v9 = vpop.f32.mrb[37].mxu0  ;;  %v1978_v56 = vpop.f32.mrb[22].mxu1 }
 0x275   : > { %1612 = vst [vmem:[%s2804_s13 + $0x30] sm:$0xff] %v1596_v14  ;;  %v1594_v55 = vsel %vm1578_vm14, %v1447_v9, %v1321_v44  ;;  %v1324_v19 = vsel %vm1308_vm13, %v1978_v56, %v2766_v25  ;;  %v2010_v49 = vpop.f32.mrb[38].mxu0  ;;  %v1177_v51 = vpop.f32.mrb[23].mxu1  ;;  %vm1583_vm13 = vcmp.eq.s32.totalorder %v1555_v62, 1 }
 0x276   : > { %1610 = vst [vmem:[%s2804_s13 + $0x20] sm:$0xff] %v1594_v55  ;;  %v1597_v57 = vsel %vm1581_vm0, %v2010_v49, %v1324_v19  ;;  %v1322_v53 = vsel %vm1306_vm15, %v1177_v51, %v2768_v28  ;;  %v1450_v60 = vpop.f32.mrb[39].mxu0  ;;  %v1552_v28 = vpop.permute.xlu1 %1551 }
 0x277   : > { %1613 = vst [vmem:[%s2804_s13 + $0x38] sm:$0xff] %v1597_v57  ;;  %v1595_v22 = vsel %vm1579_vm1, %v1450_v60, %v1322_v53  ;;  %vm1582_vm11 = vcmp.eq.s32.totalorder %v1552_v28, 1 }
 0x278   : > { %1611 = vst [vmem:[%s2804_s13 + $0x28] sm:$0xff] %v1595_v22 }
 0x27a   : > { %v1981_v61 = vpop.f32.mrb[24].mxu1 }
 0x27b   : > { %v1327_v45 = vsel %vm1311_vm2, %v1981_v61, %v2773_v33  ;;  %v1190_v34 = vpop.f32.mrb[25].mxu1  ;;  %v1558_v33 = vpop.permute.xlu1 %1557 }
 0x27c   : > { %v1325_v25 = vsel %vm1309_vm3, %v1190_v34, %v2776_v48  ;;  %v1982_v36 = vpop.f32.mrb[26].mxu1  ;;  %vm1584_vm10 = vcmp.eq.s32.totalorder %v1558_v33, 1 }
 0x27d   : > { %v1328_v2 = vsel %vm1312_vm4, %v1982_v36, %v2779_v50  ;;  %v1193_v35 = vpop.f32.mrb[27].mxu1  ;;  %v1561_v50 = vpop.permute.xlu0 %1560 }
 0x27e   : > { %v1326_v5 = vsel %vm1310_vm5, %v1193_v35, %v2781_v54  ;;  %vm1585_vm12 = vcmp.eq.s32.totalorder %v1561_v50, 1 }
 0x27f   : > { %v1564_v0 = vpop.permute.xlu1 %1563 }
 0x280   : > { %vm1586_vm15 = vcmp.eq.s32.totalorder %v1564_v0, 1 }
 0x281   : > { %v1567_v16 = vpop.permute.xlu0 %1566 }
 0x282   : > { %v1985_v58 = vpop.f32.mrb[28].mxu1  ;;  %vm1587_vm1 = vcmp.eq.s32.totalorder %v1567_v16, 1 }
 0x283   : > { %v1331_v63 = vsel %vm1315_vm6, %v1985_v58, %v2785_v37  ;;  %v1206_v6 = vpop.f32.mrb[29].mxu1  ;;  %v1570_v41 = vpop.permute.xlu1 %1569 }
 0x284   : > { %v1329_v59 = vsel %vm1313_vm7, %v1206_v6, %v2788_v3  ;;  %v1986_v48 = vpop.f32.mrb[30].mxu1  ;;  %vm1588_vm14 = vcmp.eq.s32.totalorder %v1570_v41, 1 }
 0x285   : > { %v1332_v54 = vsel %vm1316_vm8, %v1986_v48, %v2792_v8  ;;  %v1209_v15 = vpop.f32.mrb[31].mxu1  ;;  %v1573_v17 = vpop.permute.xlu0 %1572 }
 0x286   : > { %v1330_v40 = vsel %vm1314_vm9, %v1209_v15, %v2794_v12  ;;  %vm1589_vm0 = vcmp.eq.s32.totalorder %v1573_v17, 1 }
 0x28a   : > { %v2013_v37 = vpop.f32.mrb[32].mxu1 }
 0x28b   : > { %v1600_v10 = vsel %vm1584_vm10, %v2013_v37, %v1327_v45  ;;  %v1463_v3 = vpop.f32.mrb[33].mxu1 }
 0x28c   : > { %1616 = vst [vmem:[%s2804_s13 + $0x50] sm:$0xff] %v1600_v10  ;;  %v1598_v1 = vsel %vm1582_vm11, %v1463_v3, %v1325_v25  ;;  %v2014_v38 = vpop.f32.mrb[34].mxu1 }
 0x28d   : > { %1614 = vst [vmem:[%s2804_s13 + $0x40] sm:$0xff] %v1598_v1  ;;  %v1601_v8 = vsel %vm1585_vm12, %v2014_v38, %v1328_v2  ;;  %v1466_v12 = vpop.f32.mrb[35].mxu1 }
 0x28e   : > { %1617 = vst [vmem:[%s2804_s13 + $0x58] sm:$0xff] %v1601_v8  ;;  %v1599_v13 = vsel %vm1583_vm13, %v1466_v12, %v1326_v5 }
 0x28f   : > { %1615 = vst [vmem:[%s2804_s13 + $0x48] sm:$0xff] %v1599_v13 }
 0x292   : > { %v2017_v18 = vpop.f32.mrb[36].mxu1 }
 0x293   : > { %v1604_v39 = vsel %vm1588_vm14, %v2017_v18, %v1331_v63  ;;  %v1479_v20 = vpop.f32.mrb[37].mxu1 }
 0x294   : > { %1620 = vst [vmem:[%s2804_s13 + $0x70] sm:$0xff] %v1604_v39  ;;  %v1602_v21 = vsel %vm1586_vm15, %v1479_v20, %v1329_v59  ;;  %v2018_v23 = vpop.f32.mrb[38].mxu1 }
 0x295   : > { %1618 = vst [vmem:[%s2804_s13 + $0x60] sm:$0xff] %v1602_v21  ;;  %v1605_v24 = vsel %vm1589_vm0, %v2018_v23, %v1332_v54  ;;  %v1482_v42 = vpop.f32.mrb[39].mxu1 }
 0x296   : > { %1621 = vst [vmem:[%s2804_s13 + $0x78] sm:$0xff] %v1605_v24  ;;  %v1603_v47 = vsel %vm1587_vm1, %v1482_v42, %v1330_v40 }
 0x297   : > { %1619 = vst [vmem:[%s2804_s13 + $0x68] sm:$0xff] %v1603_v47 }
 0x298   : > { %2133 = shalt.err (!%p2130_p3)
}
 0x299   : > { %s2134_s17 = scalar_lea.hbm %s2851_s9, 2048  ;;  %s2138_s26 = scalar_lea.hbm %s2906_s5, 4096 }
 0x29a   : > { %p2135_p4 = scmp.ne.s32.totalorder %s2851_s9, %s2134_s17  ;;  %p2139_p9 = scmp.lt.u32.totalorder %s2851_s9, %s2906_s5 }
 0x29b   : > { %p2140_p10 = scmp.lt.u32.totalorder %s2138_s26, %s2134_s17  ;;  %p2142_p12 = scmp.lt.u32.totalorder %s2134_s17, %s2851_s9 }
 0x29c   : > { %p2136_p7 = pnand %p2135_p4, %p2257_p5 }
 0x29d   : > { %p2141_p11 = por %p2140_p10, %p2139_p9 }
 0x29e   : > { %p2137_p8 = pneg %p2136_p7 }
 0x29f   : > { %p2143_p13 = por %p2142_p12, %p2141_p11 }
 0x2a1   : > { %p2144_p0 = pnand %p2143_p13, %p2137_p8 }
 0x2a3   : > { %2147 = shalt.err (!%p2144_p0)
}
 0x2a4   : > { %s2187_s13 = smov 128   ;;  %s2188_s8 = smov 8  }
 0x2a5   : > { %2035 = dma.vmem_to_hbm [thread:$0]  (%p2257_p5), %s2853_s7, 2048, %s2851_s9, %s2860_s22, %s2187_s13, %s2187_s13, %s2188_s8  }
 0x2a6 PF: > { %p2041_p1 = scmp.ge.s32.totalorder %s2182_s21, 2  ;;  %s1651_s10 = sand.u32 1, %s2170_s18  }
 0x2a7   : > { %s1652_s16 = scalar_lea.sflag [#allocation4], %s1651_s10 }
 0x2a8   : > { %p2038_p2 = pnand %p2041_p1, %p2261_p6 }
 0x2aa   : > { %2165 = dma.done.wait (!%p2038_p2), %s1652_s16, 2048  }
 0x2ab   : > { %2167 = vsyncadd (!%p2038_p2), %s1652_s16, 4294965248  ;;  %p15_p3 = scmp.ge.s32.totalorder %s2244_s24, 4   ;;  %s2909_s18 = smov %s2174_s19 }
 0x2ac   : > { %s2910_s19 = smov %s2178_s20  ;;  %s2911_s20 = smov %s2255_s27 }
 0x2ad   : > { %s2912_s21 = smov %s2244_s24  ;;  %17 = sbr.rel (!%p15_p3) target bundleno = 3 (0x3), region = 81 }
 0x2b4   :  { %1657 = vsyncpa [#allocation4], 1 }
 0x2b5   :  { %1659 = vsyncpa [#allocation4 + $0x1], 1 }

</bundles_post_ra>
